<compile_context>
chip_gen: v7x
topology: tpu7x:2x2x1
jax: 0.10.0
libtpu: 0.0.40
codegen_flags: <defaults>
</compile_context>

<pallas_src>
import functools

import jax
import jax.numpy as jnp
from jax.experimental import pallas as pl
from jax.experimental.pallas import tpu as pltpu


# ---------------------------------------------------------------------------
# Attention block kernel:  y = x + Proj(Attn(LN1(x)))               grid = (B,)
# ---------------------------------------------------------------------------
def _attn_block_kernel(x_ref, g1_ref, b1_ref, wqkv_ref, bqkv_ref, wp_ref,
                       bp_ref, o_ref, *, num_heads, head_dim, eps):
    x = x_ref[0]                                          # (N, C) f32

    # LayerNorm1: computed once per batch row (hoisted out of the head loop).
    mu = jnp.mean(x, axis=-1, keepdims=True)
    var = jnp.mean(jnp.square(x - mu), axis=-1, keepdims=True)
    xn = (x - mu) * jax.lax.rsqrt(var + eps) * g1_ref[...] + b1_ref[...]
    xn = xn.astype(jnp.bfloat16)

    def head_body(h, acc):
        # Fused per-head QKV projection: (N, C) @ (C, 3*Dh).  The softmax
        # scale is pre-folded into the q third of wqkv / bqkv host-side.
        qkv = (jnp.dot(xn, wqkv_ref[h], preferred_element_type=jnp.float32)
               + bqkv_ref[h])                             # (N, 3*Dh) f32
        q = qkv[:, :head_dim].astype(jnp.bfloat16)
        k = qkv[:, head_dim:2 * head_dim].astype(jnp.bfloat16)
        v = qkv[:, 2 * head_dim:].astype(jnp.bfloat16)

        # Scores: contract last dims of q and k directly (no k.T transpose).
        s = jax.lax.dot_general(
            q, k, dimension_numbers=(((1,), (1,)), ((), ())),
            preferred_element_type=jnp.float32)           # (N, N) f32

        # Softmax (f32); EUP approx reciprocal instead of a VALU divide.
        s = s - jnp.max(s, axis=-1, keepdims=True)
        p = jnp.exp(s)
        attn = p * pl.reciprocal(jnp.sum(p, axis=-1, keepdims=True),
                                 approx=True)
        # attn_drop: identity (eval mode)

        head_out = jnp.dot(attn.astype(jnp.bfloat16), v,
                           preferred_element_type=jnp.float32)       # (N, Dh)

        # Fused "concat heads + output projection": accumulate head's slice.
        return acc + jnp.dot(head_out.astype(jnp.bfloat16), wp_ref[h],
                             preferred_element_type=jnp.float32)     # (N, C)

    acc0 = x + bp_ref[...]                         # residual + proj bias, f32
    acc = jax.lax.fori_loop(0, num_heads, head_body, acc0)
    # proj_drop: identity (eval mode)
    o_ref[0] = acc.astype(o_ref.dtype)             # one lane-dense (N, C) store


# ---------------------------------------------------------------------------
# MLP block kernel:  z = y + fc2(GELU(fc1(LN2(y))))       grid = (rows // TM,)
# ---------------------------------------------------------------------------
def _mlp_block_kernel(y_ref, g2_ref, b2_ref, w1_ref, bb1_ref, w2_ref, bb2_ref,
                      o_ref, *, eps):
    y = y_ref[...]                                        # (TM, C) f32
    mu = jnp.mean(y, axis=-1, keepdims=True)
    var = jnp.mean(jnp.square(y - mu), axis=-1, keepdims=True)
    yn = (y - mu) * jax.lax.rsqrt(var + eps) * g2_ref[...] + b2_ref[...]

    hmid = jnp.dot(yn.astype(jnp.bfloat16), w1_ref[...],
                   preferred_element_type=jnp.float32) + bb1_ref[...]
    # TODO(synk): PyTorch nn.GELU() is exact erf-GELU; tanh approximation used
    # here (guaranteed Mosaic lowering), deviation is far below test tolerance.
    hmid = jax.nn.gelu(hmid, approximate=True)
    # drop: identity (eval mode)
    out = jnp.dot(hmid.astype(jnp.bfloat16), w2_ref[...],
                  preferred_element_type=jnp.float32) + bb2_ref[...]
    o_ref[...] = (y + out).astype(o_ref.dtype)


# ---------------------------------------------------------------------------
# Helpers
# ---------------------------------------------------------------------------
def _round_up(x, m):
    return ((x + m - 1) // m) * m


def _nbytes(*arrays):
    return sum(int(a.size) * a.dtype.itemsize for a in arrays)


def _physical_vmem_bytes():
    """Physical VMEM of the local TPU generation (fallback: v7x-sized 64 MiB)."""
    try:
        return int(pltpu.get_tpu_info().vmem_capacity_bytes)
    except Exception:
        return 64 << 20


def _pick_row_tile(m, c, hidden, weight_bytes, cap):
    """Largest multiple-of-8 row tile (<= 512) whose working set fits `cap`."""
    tm = min(512, _round_up(m, 8))
    while tm > 8:
        need = (2 * (2 * tm * c * 4 + weight_bytes)   # 2-buffered blocks + weights
                + tm * hidden * 4 + (8 << 20))        # f32 intermediate + headroom
        if need <= cap:
            break
        tm = max(8, _round_up(tm // 2, 8))
    return tm


# ---------------------------------------------------------------------------
# Wrapper: full Block forward
# ---------------------------------------------------------------------------
def vit_block_forward(x, params, num_heads):
    B, N, C = x.shape
    H = num_heads
    Dh = C // H
    scale = float(Dh) ** -0.5
    eps = 1e-5
    f32, bf16 = jnp.float32, jnp.bfloat16
    cap = (3 * _physical_vmem_bytes()) // 4          # VMEM budget ceiling

    # --- attention weights: fused per-head QKV, softmax scale folded into q --
    w_qkv = jnp.asarray(params["w_qkv"], f32).reshape(3, H, Dh, C)
    wqkv = jnp.transpose(w_qkv, (1, 3, 0, 2)).reshape(H, C, 3 * Dh)
    scale_vec = jnp.concatenate(
        [jnp.full((Dh,), scale, f32), jnp.ones((2 * Dh,), f32)])
    wqkv = (wqkv * scale_vec).astype(bf16)                        # (H, C, 3Dh)
    bqkv = jnp.asarray(params["b_qkv"], f32).reshape(3, H, Dh)
    bqkv = (jnp.transpose(bqkv, (1, 0, 2)).reshape(H, 1, 3 * Dh)
            * scale_vec)                                          # (H, 1, 3Dh) f32
    wp = jnp.asarray(params["w_proj"], f32).T.reshape(H, Dh, C).astype(bf16)
    bp = jnp.asarray(params["b_proj"], f32).reshape(1, C)
    g1 = jnp.asarray(params["ln1_g"], f32).reshape(1, C)
    b1 = jnp.asarray(params["ln1_b"], f32).reshape(1, C)

    attn_kernel = functools.partial(
        _attn_block_kernel, num_heads=H, head_dim=Dh, eps=eps)

    resident = _nbytes(g1, b1, wqkv, bqkv, wp, bp)   # fetched once, stay in VMEM
    stream = 2 * N * C * 4                           # x block + out block (f32)
    scratch = N * N * 4 + 3 * N * Dh * 4 + 2 * N * C * 4
    vmem_a = int(min(max(2 * (stream + resident) + scratch + (8 << 20),
                         16 << 20), cap))

    const3 = lambda b: (0, 0, 0)
    const2 = lambda b: (0, 0)
    y1 = pl.pallas_call(
        attn_kernel,
        out_shape=jax.ShapeDtypeStruct((B, N, C), x.dtype),
        grid=(B,),
        in_specs=[
            pl.BlockSpec((1, N, C), lambda b: (b, 0, 0)),        # x row block
            # Full-array blocks with constant index maps: the pipeline fetches
            # them once and never re-DMAs them across grid steps (VMEM-resident).
            pl.BlockSpec((1, C), const2),                        # ln1 gamma
            pl.BlockSpec((1, C), const2),                        # ln1 beta
            pl.BlockSpec((H, C, 3 * Dh), const3),                # fused Wqkv (scaled)
            pl.BlockSpec((H, 1, 3 * Dh), const3),                # fused bqkv (scaled)
            pl.BlockSpec((H, Dh, C), const3),                    # Wproj per head
            pl.BlockSpec((1, C), const2),                        # b_proj
        ],
        out_specs=pl.BlockSpec((1, N, C), lambda b: (b, 0, 0)),
        compiler_params=pltpu.CompilerParams(
            dimension_semantics=("parallel",),
            vmem_limit_bytes=vmem_a),
    )(x, g1, b1, wqkv, bqkv, wp, bp)

    # --- MLP block on flattened, padded rows ---------------------------------
    hidden = params["w_fc1"].shape[0]
    w1 = jnp.asarray(params["w_fc1"], f32).T.astype(bf16)     # (C, hidden)
    bb1 = jnp.asarray(params["b_fc1"], f32).reshape(1, hidden)
    w2 = jnp.asarray(params["w_fc2"], f32).T.astype(bf16)     # (hidden, C)
    bb2 = jnp.asarray(params["b_fc2"], f32).reshape(1, C)
    g2 = jnp.asarray(params["ln2_g"], f32).reshape(1, C)
    b2 = jnp.asarray(params["ln2_b"], f32).reshape(1, C)

    M = B * N
    weight_bytes = _nbytes(g2, b2, w1, bb1, w2, bb2)
    tm = _pick_row_tile(M, C, hidden, weight_bytes, cap)
    M_pad = _round_up(M, tm)
    y1_flat = y1.reshape(M, C)
    if M_pad != M:
        # Pad rows so every tile is a full, lane-dense (tm, C) block; padded
        # rows are harmless (LN of zeros) and sliced off after the call.
        y1_flat = jnp.pad(y1_flat, ((0, M_pad - M), (0, 0)))

    vmem_b = int(min(max(2 * (2 * tm * C * 4 + weight_bytes)
                         + tm * hidden * 4 + (8 << 20), 16 << 20), cap))
    mlp_kernel = functools.partial(_mlp_block_kernel, eps=eps)
    y2_flat = pl.pallas_call(
        mlp_kernel,
        out_shape=jax.ShapeDtypeStruct((M_pad, C), x.dtype),
        grid=(M_pad // tm,),
        in_specs=[
            pl.BlockSpec((tm, C), lambda i: (i, 0)),            # y row tile
            pl.BlockSpec((1, C), lambda i: (0, 0)),             # ln2 gamma
            pl.BlockSpec((1, C), lambda i: (0, 0)),             # ln2 beta
            pl.BlockSpec((C, hidden), lambda i: (0, 0)),        # W_fc1^T (resident)
            pl.BlockSpec((1, hidden), lambda i: (0, 0)),        # b_fc1
            pl.BlockSpec((hidden, C), lambda i: (0, 0)),        # W_fc2^T (resident)
            pl.BlockSpec((1, C), lambda i: (0, 0)),             # b_fc2
        ],
        out_specs=pl.BlockSpec((tm, C), lambda i: (i, 0)),
        compiler_params=pltpu.CompilerParams(
            dimension_semantics=("parallel",),
            vmem_limit_bytes=vmem_b),
    )(y1_flat, g2, b2, w1, bb1, w2, bb2)

    return y2_flat[:M].reshape(B, N, C)


# ---------------------------------------------------------------------------
# Pure-JAX reference mirroring the PyTorch Block forward (eval mode, f32)
# ---------------------------------------------------------------------------
def _reference(x, p, num_heads):
    eps = 1e-5

    def ln(z, g, b):
        mu = z.mean(-1, keepdims=True)
        var = ((z - mu) ** 2).mean(-1, keepdims=True)
        return (z - mu) / jnp.sqrt(var + eps) * g + b

    B, N, C = x.shape
    Dh = C // num_heads
    xn = ln(x, p["ln1_g"], p["ln1_b"])
    qkv = xn @ p["w_qkv"].T + p["b_qkv"]
    qkv = qkv.reshape(B, N, 3, num_heads, Dh).transpose(2, 0, 3, 1, 4)
    q, k, v = qkv[0], qkv[1], qkv[2]
    attn = jnp.einsum("bhnd,bhmd->bhnm", q, k) * (Dh ** -0.5)
    attn = jax.nn.softmax(attn, axis=-1)
    out = jnp.einsum("bhnm,bhmd->bhnd", attn, v)
    out = out.transpose(0, 2, 1, 3).reshape(B, N, C)
    y1 = x + (out @ p["w_proj"].T + p["b_proj"])
    yn = ln(y1, p["ln2_g"], p["ln2_b"])
    h = jax.nn.gelu(yn @ p["w_fc1"].T + p["b_fc1"], approximate=False)
    return y1 + (h @ p["w_fc2"].T + p["b_fc2"])


if __name__ == "__main__":
    B, N, C = 2, 8, 32
    num_heads = 4
    mlp_hidden = int(C * 4.0)

    key = jax.random.PRNGKey(0)
    keys = jax.random.split(key, 13)

    x = jax.random.normal(keys[0], (B, N, C), dtype=jnp.float32)
    params = {
        "ln1_g": 1.0 + 0.1 * jax.random.normal(keys[1], (C,), jnp.float32),
        "ln1_b": 0.1 * jax.random.normal(keys[2], (C,), jnp.float32),
        "w_qkv": 0.02 * jax.random.normal(keys[3], (3 * C, C), jnp.float32),
        "b_qkv": 0.02 * jax.random.normal(keys[4], (3 * C,), jnp.float32),
        "w_proj": 0.02 * jax.random.normal(keys[5], (C, C), jnp.float32),
        "b_proj": 0.02 * jax.random.normal(keys[6], (C,), jnp.float32),
        "ln2_g": 1.0 + 0.1 * jax.random.normal(keys[7], (C,), jnp.float32),
        "ln2_b": 0.1 * jax.random.normal(keys[8], (C,), jnp.float32),
        "w_fc1": 0.02 * jax.random.normal(keys[9], (mlp_hidden, C), jnp.float32),
        "b_fc1": 0.02 * jax.random.normal(keys[10], (mlp_hidden,), jnp.float32),
        "w_fc2": 0.02 * jax.random.normal(keys[11], (C, mlp_hidden), jnp.float32),
        "b_fc2": 0.02 * jax.random.normal(keys[12], (C,), jnp.float32),
    }

    out = vit_block_forward(x, params, num_heads)
    out = jax.block_until_ready(out)

    ref = _reference(x, params, num_heads)
    assert out.shape == (B, N, C)
    max_err = float(jnp.max(jnp.abs(out - ref)))
    # bf16 matmul inputs + approx reciprocal -> loosened tolerance vs f32 ref.
    assert jnp.allclose(out, ref, atol=2e-2, rtol=2e-2), (
        f"mismatch vs reference (max abs err={max_err})")

    print("KERNEL_OK")
</pallas_src>

<mosaic_0001>
module attributes {stable_mosaic.version = 11 : i64} {
  func.func @_attn_block_kernel(%arg0: i32, %arg1: memref<1x8x32xf32, #tpu.memory_space<vmem>>, %arg2: memref<1x32xf32, #tpu.memory_space<vmem>>, %arg3: memref<1x32xf32, #tpu.memory_space<vmem>>, %arg4: memref<4x32x24xbf16, #tpu.memory_space<vmem>>, %arg5: memref<4x1x24xf32, #tpu.memory_space<vmem>>, %arg6: memref<4x8x32xbf16, #tpu.memory_space<vmem>>, %arg7: memref<1x32xf32, #tpu.memory_space<vmem>>, %arg8: memref<1x8x32xf32, #tpu.memory_space<vmem>>) attributes {dimension_semantics = [#tpu.dimension_semantics<parallel>], iteration_bounds = array<i64: 2>, scalar_prefetch = 0 : i64, scratch_operands = 0 : i64, tpu.core_type = #tpu.core_type<tc>, window_params = [{transform_indices = @transform_0, window_bounds = array<i64: 1, 8, 32>}, {pipeline_mode = #tpu.pipeline_mode<synchronous>, transform_indices = @transform_1, window_bounds = array<i64: 1, 32>}, {pipeline_mode = #tpu.pipeline_mode<synchronous>, transform_indices = @transform_2, window_bounds = array<i64: 1, 32>}, {pipeline_mode = #tpu.pipeline_mode<synchronous>, transform_indices = @transform_3, window_bounds = array<i64: 4, 32, 24>}, {pipeline_mode = #tpu.pipeline_mode<synchronous>, transform_indices = @transform_4, window_bounds = array<i64: 4, 1, 24>}, {pipeline_mode = #tpu.pipeline_mode<synchronous>, transform_indices = @transform_5, window_bounds = array<i64: 4, 8, 32>}, {pipeline_mode = #tpu.pipeline_mode<synchronous>, transform_indices = @transform_6, window_bounds = array<i64: 1, 32>}, {transform_indices = @transform_7, window_bounds = array<i64: 1, 8, 32>}]} {
    %c0 = arith.constant 0 : index
    %c0_0 = arith.constant 0 : index
    %c0_1 = arith.constant 0 : index
    %0 = vector.load %arg1[%c0, %c0_0, %c0_1] : memref<1x8x32xf32, #tpu.memory_space<vmem>>, vector<1x8x32xf32>
    %1 = vector.shape_cast %0 : vector<1x8x32xf32> to vector<8x32xf32>
    %cst = arith.constant dense<0.000000e+00> : vector<8xf32>
    %2 = vector.multi_reduction <add>, %1, %cst [1] : vector<8x32xf32> to vector<8xf32>
    %3 = vector.shape_cast %2 : vector<8xf32> to vector<8x1xf32>
    %cst_2 = arith.constant 3.200000e+01 : f32
    %4 = vector.broadcast %cst_2 : f32 to vector<8x1xf32>
    %5 = arith.divf %3, %4 : vector<8x1xf32>
    %6 = vector.broadcast %5 : vector<8x1xf32> to vector<8x32xf32>
    %7 = arith.subf %1, %6 : vector<8x32xf32>
    %8 = arith.mulf %7, %7 : vector<8x32xf32>
    %cst_3 = arith.constant dense<0.000000e+00> : vector<8xf32>
    %9 = vector.multi_reduction <add>, %8, %cst_3 [1] : vector<8x32xf32> to vector<8xf32>
    %10 = vector.shape_cast %9 : vector<8xf32> to vector<8x1xf32>
    %cst_4 = arith.constant 3.200000e+01 : f32
    %11 = vector.broadcast %cst_4 : f32 to vector<8x1xf32>
    %12 = arith.divf %10, %11 : vector<8x1xf32>
    %13 = vector.broadcast %5 : vector<8x1xf32> to vector<8x32xf32>
    %14 = arith.subf %1, %13 : vector<8x32xf32>
    %cst_5 = arith.constant 9.99999974E-6 : f32
    %15 = vector.broadcast %cst_5 : f32 to vector<8x1xf32>
    %16 = arith.addf %12, %15 : vector<8x1xf32>
    %17 = math.rsqrt %16 : vector<8x1xf32>
    %18 = vector.broadcast %17 : vector<8x1xf32> to vector<8x32xf32>
    %19 = arith.mulf %14, %18 : vector<8x32xf32>
    %c0_6 = arith.constant 0 : index
    %c0_7 = arith.constant 0 : index
    %20 = vector.load %arg2[%c0_6, %c0_7] : memref<1x32xf32, #tpu.memory_space<vmem>>, vector<1x32xf32>
    %21 = vector.broadcast %20 : vector<1x32xf32> to vector<8x32xf32>
    %22 = arith.mulf %19, %21 : vector<8x32xf32>
    %c0_8 = arith.constant 0 : index
    %c0_9 = arith.constant 0 : index
    %23 = vector.load %arg3[%c0_8, %c0_9] : memref<1x32xf32, #tpu.memory_space<vmem>>, vector<1x32xf32>
    %24 = vector.broadcast %23 : vector<1x32xf32> to vector<8x32xf32>
    %25 = arith.addf %22, %24 : vector<8x32xf32>
    %26 = arith.truncf %25 : vector<8x32xf32> to vector<8x32xbf16>
    %c0_10 = arith.constant 0 : index
    %c0_11 = arith.constant 0 : index
    %27 = vector.load %arg7[%c0_10, %c0_11] : memref<1x32xf32, #tpu.memory_space<vmem>>, vector<1x32xf32>
    %28 = vector.broadcast %27 : vector<1x32xf32> to vector<8x32xf32>
    %29 = arith.addf %1, %28 : vector<8x32xf32>
    %c0_i32 = arith.constant 0 : i32
    %c4_i32 = arith.constant 4 : i32
    %30 = arith.addi %c0_i32, %c4_i32 : i32
    %c1_i32 = arith.constant 1 : i32
    %31 = scf.for %arg9 = %c0_i32 to %30 step %c1_i32 iter_args(%arg10 = %29) -> (vector<8x32xf32>)  : i32 {
      %35 = arith.index_cast %arg9 : i32 to index
      %c0_16 = arith.constant 0 : index
      %c0_17 = arith.constant 0 : index
      %36 = vector.load %arg4[%35, %c0_16, %c0_17] : memref<4x32x24xbf16, #tpu.memory_space<vmem>>, vector<1x32x24xbf16>
      %37 = vector.shape_cast %36 : vector<1x32x24xbf16> to vector<32x24xbf16>
      %cst_18 = arith.constant dense<0.000000e+00> : vector<8x24xf32>
      %38 = tpu.matmul %26, %37, %cst_18 {dimension_numbers = #tpu.dot_dimension_numbers<[1], [0], [0], [1], [0, 0, 1, 1], [], []>} : vector<8x32xbf16>, vector<32x24xbf16>, vector<8x24xf32> -> vector<8x24xf32>
      %39 = arith.index_cast %arg9 : i32 to index
      %c0_19 = arith.constant 0 : index
      %c0_20 = arith.constant 0 : index
      %40 = vector.load %arg5[%39, %c0_19, %c0_20] : memref<4x1x24xf32, #tpu.memory_space<vmem>>, vector<1x1x24xf32>
      %41 = vector.shape_cast %40 : vector<1x1x24xf32> to vector<1x24xf32>
      %42 = vector.broadcast %41 : vector<1x24xf32> to vector<8x24xf32>
      %43 = arith.addf %38, %42 : vector<8x24xf32>
      %44 = vector.extract_strided_slice %43 {offsets = [0, 0], sizes = [8, 8], strides = [1, 1]} : vector<8x24xf32> to vector<8x8xf32>
      %45 = arith.truncf %44 : vector<8x8xf32> to vector<8x8xbf16>
      %46 = vector.extract_strided_slice %43 {offsets = [0, 8], sizes = [8, 8], strides = [1, 1]} : vector<8x24xf32> to vector<8x8xf32>
      %47 = arith.truncf %46 : vector<8x8xf32> to vector<8x8xbf16>
      %48 = vector.extract_strided_slice %43 {offsets = [0, 16], sizes = [8, 8], strides = [1, 1]} : vector<8x24xf32> to vector<8x8xf32>
      %49 = arith.truncf %48 : vector<8x8xf32> to vector<8x8xbf16>
      %cst_21 = arith.constant dense<0.000000e+00> : vector<8x8xf32>
      %50 = tpu.matmul %45, %47, %cst_21 {dimension_numbers = #tpu.dot_dimension_numbers<[1], [1], [0], [0], [0, 0, 1, 0], [], []>} : vector<8x8xbf16>, vector<8x8xbf16>, vector<8x8xf32> -> vector<8x8xf32>
      %cst_22 = arith.constant dense<0xFF800000> : vector<8xf32>
      %51 = vector.multi_reduction <maximumf>, %50, %cst_22 [1] : vector<8x8xf32> to vector<8xf32>
      %52 = vector.shape_cast %51 : vector<8xf32> to vector<8x1xf32>
      %53 = vector.broadcast %52 : vector<8x1xf32> to vector<8x8xf32>
      %54 = arith.subf %50, %53 : vector<8x8xf32>
      %55 = math.exp %54 : vector<8x8xf32>
      %cst_23 = arith.constant dense<0.000000e+00> : vector<8xf32>
      %56 = vector.multi_reduction <add>, %55, %cst_23 [1] : vector<8x8xf32> to vector<8xf32>
      %57 = vector.shape_cast %56 : vector<8xf32> to vector<8x1xf32>
      %58 = tpu.reciprocal %57 {approx = true} : vector<8x1xf32> -> vector<8x1xf32>
      %59 = vector.broadcast %58 : vector<8x1xf32> to vector<8x8xf32>
      %60 = arith.mulf %55, %59 : vector<8x8xf32>
      %61 = arith.truncf %60 : vector<8x8xf32> to vector<8x8xbf16>
      %cst_24 = arith.constant dense<0.000000e+00> : vector<8x8xf32>
      %62 = tpu.matmul %61, %49, %cst_24 {dimension_numbers = #tpu.dot_dimension_numbers<[1], [0], [0], [1], [0, 0, 1, 1], [], []>} : vector<8x8xbf16>, vector<8x8xbf16>, vector<8x8xf32> -> vector<8x8xf32>
      %63 = arith.truncf %62 : vector<8x8xf32> to vector<8x8xbf16>
      %64 = arith.index_cast %arg9 : i32 to index
      %c0_25 = arith.constant 0 : index
      %c0_26 = arith.constant 0 : index
      %65 = vector.load %arg6[%64, %c0_25, %c0_26] : memref<4x8x32xbf16, #tpu.memory_space<vmem>>, vector<1x8x32xbf16>
      %66 = vector.shape_cast %65 : vector<1x8x32xbf16> to vector<8x32xbf16>
      %cst_27 = arith.constant dense<0.000000e+00> : vector<8x32xf32>
      %67 = tpu.matmul %63, %66, %cst_27 {dimension_numbers = #tpu.dot_dimension_numbers<[1], [0], [0], [1], [0, 0, 1, 1], [], []>} : vector<8x8xbf16>, vector<8x32xbf16>, vector<8x32xf32> -> vector<8x32xf32>
      %68 = arith.addf %arg10, %67 : vector<8x32xf32>
      scf.yield %68 : vector<8x32xf32>
    }
    %c4_i32_12 = arith.constant 4 : i32
    %c0_13 = arith.constant 0 : index
    %c0_14 = arith.constant 0 : index
    %c0_15 = arith.constant 0 : index
    %32 = vector.load %arg8[%c0_13, %c0_14, %c0_15] : memref<1x8x32xf32, #tpu.memory_space<vmem>>, vector<1x8x32xf32>
    %33 = vector.shape_cast %32 : vector<1x8x32xf32> to vector<8x32xf32>
    %34 = vector.shape_cast %31 : vector<8x32xf32> to vector<1x8x32xf32>
    tpu.vector_store %arg8[%c0_13, %c0_14, %c0_15], %34 {strides = array<i32>} : memref<1x8x32xf32, #tpu.memory_space<vmem>>, vector<1x8x32xf32>,
    return
  }
  func.func @transform_0(%arg0: i32) -> (i32, i32, i32) {
    %c0_i32 = arith.constant 0 : i32
    %c0_i32_0 = arith.constant 0 : i32
    %c0_i32_1 = arith.constant 0 : i32
    return %arg0, %c0_i32, %c0_i32_0 : i32, i32, i32
  }
  func.func @transform_1(%arg0: i32) -> (i32, i32) {
    %c0_i32 = arith.constant 0 : i32
    %c0_i32_0 = arith.constant 0 : i32
    %c0_i32_1 = arith.constant 0 : i32
    return %c0_i32, %c0_i32_0 : i32, i32
  }
  func.func @transform_2(%arg0: i32) -> (i32, i32) {
    %c0_i32 = arith.constant 0 : i32
    %c0_i32_0 = arith.constant 0 : i32
    %c0_i32_1 = arith.constant 0 : i32
    return %c0_i32, %c0_i32_0 : i32, i32
  }
  func.func @transform_3(%arg0: i32) -> (i32, i32, i32) {
    %c0_i32 = arith.constant 0 : i32
    %c0_i32_0 = arith.constant 0 : i32
    %c0_i32_1 = arith.constant 0 : i32
    %c0_i32_2 = arith.constant 0 : i32
    return %c0_i32, %c0_i32_0, %c0_i32_1 : i32, i32, i32
  }
  func.func @transform_4(%arg0: i32) -> (i32, i32, i32) {
    %c0_i32 = arith.constant 0 : i32
    %c0_i32_0 = arith.constant 0 : i32
    %c0_i32_1 = arith.constant 0 : i32
    %c0_i32_2 = arith.constant 0 : i32
    return %c0_i32, %c0_i32_0, %c0_i32_1 : i32, i32, i32
  }
  func.func @transform_5(%arg0: i32) -> (i32, i32, i32) {
    %c0_i32 = arith.constant 0 : i32
    %c0_i32_0 = arith.constant 0 : i32
    %c0_i32_1 = arith.constant 0 : i32
    %c0_i32_2 = arith.constant 0 : i32
    return %c0_i32, %c0_i32_0, %c0_i32_1 : i32, i32, i32
  }
  func.func @transform_6(%arg0: i32) -> (i32, i32) {
    %c0_i32 = arith.constant 0 : i32
    %c0_i32_0 = arith.constant 0 : i32
    %c0_i32_1 = arith.constant 0 : i32
    return %c0_i32, %c0_i32_0 : i32, i32
  }
  func.func @transform_7(%arg0: i32) -> (i32, i32, i32) {
    %c0_i32 = arith.constant 0 : i32
    %c0_i32_0 = arith.constant 0 : i32
    %c0_i32_1 = arith.constant 0 : i32
    return %arg0, %c0_i32, %c0_i32_0 : i32, i32, i32
  }
}

</mosaic_0001>

<bundles_post_ra>
// kernel: tpu_custom_call.1
= control target key start
LH: loop header
LB: loop body
LE: loop exit
PB: predicated region body
PF: predicated region fallthrough
CT: control target
= control target key end

     0   :  { %12 = vsyncpa [#allocation3], 0  ;;  %s1057_s0 = inlined_call_operand.vmem [shape: f32[2,8,32], index: 0, kind: input, shape index: {}]   ;;  %s1058_s1 = inlined_call_operand.vmem [shape: f32[1,32], index: 1, kind: input, shape index: {}]   ;;  %s1059_s2 = inlined_call_operand.vmem [shape: f32[1,32], index: 2, kind: input, shape index: {}]   ;;  %s1060_s3 = inlined_call_operand.vmem [shape: bf16[4,32,24], index: 3, kind: input, shape index: {}]   ;;  %s1061_s4 = inlined_call_operand.vmem [shape: f32[4,1,24], index: 4, kind: input, shape index: {}]   ;;  %s1062_s5 = inlined_call_operand.vmem [shape: bf16[4,8,32], index: 5, kind: input, shape index: {}]   ;;  %s1063_s6 = inlined_call_operand.vmem [shape: f32[1,32], index: 6, kind: input, shape index: {}]   ;;  %s1064_s7 = inlined_call_operand.hbm [shape: f32[2,8,32], index: 7, kind: output, shape index: {}]  }
   0x1   :  { %14 = vsyncpa [#allocation3 + $0x1], 0  ;;  %s894_s24 = smov 0   ;;  %s896_s25 = smov 0  }
   0x2   :  { %s898_s26 = smov 0   ;;  %s900_s27 = smov 0  }
   0x3 LB: > { %s915_s28 = sadd.s32 4294967295, %s839_s27   ;;  %s643_s29 = sadd.s32 4294967294, %s839_s27   ;;  %s839_s27 = sphi %s900_s27, %s1071_s27   ;;  %s835_s26 = sphi %s898_s26, %s1070_s26   ;;  %s831_s25 = sphi %s896_s25, %s1069_s25   ;;  %s827_s24 = sphi %s894_s24, %s1068_s24  }
   0x4   : > { %s919_s30 = sadd.s32 1, %s839_s27   ;;  %s179_s8 = sadd.s32 1, %s835_s26 }
   0x5   : > { %s176_s9 = ssub.s32 %s839_s27, %s919_s30  ;;  %p189_p0 = scmp.ne.s32.totalorder %s835_s26, %s831_s25 }
   0x6   : > { %p177_p1 = scmp.eq.s32.totalorder %s176_s9, 0  ;;  %p190_p2 = scmp.eq.s32.totalorder %s915_s28, 1 }
   0x7   : > { %p195_p3 = scmp.ne.s32.totalorder %s831_s25, %s827_s24  ;;  %p196_p4 = scmp.eq.s32.totalorder %s643_s29, 1 }
   0x8   : > { %s930_s10 = scalar_select %p177_p1, %s835_s26, %s179_s8  }
   0x9   : > { %p932_p5 = por %p190_p2, %p189_p0  ;;  %p936_p6 = por %p196_p4, %p195_p3 }
   0xa   : > { %p646_p7 = scmp.ge.s32.totalorder %s839_s27, 1  ;;  %p239_p8 = scmp.lt.s32.totalorder %s839_s27, 3 }
   0xc   : > { %p240_p9 = pnand %p646_p7, %p239_p8 }
   0xd   : > { %p270_p10 = scmp.lt.s32.totalorder (!%p240_p9), %s915_s28, 1  ;;  %vm276_vm0 = vcmask (!%p240_p9), 261120   ;;  %v651_v0 = vld [vmem:[%s1063_s6] ss:$0 sm:$0xff] (!%p240_p9)  ;;  %s267_s20 = sand.u32 (!%p240_p9), 1, %s831_s25  }
   0xe   : > { %243 = sbr.rel (%p240_p9) target bundleno = 1659 (0x67b), region = 48  ;;  %s955_s21 = sshll.u32 (!%p240_p9), %s267_s20, 3  ;;  %v649_v13 = vld [vmem:[%s1058_s1] ss:$0 sm:$0xff] (!%p240_p9) }
   0xf   : > { %v650_v15 = vld [vmem:[%s1059_s2] ss:$0 sm:$0xff] (!%p240_p9)  ;;  %s269_s9 = scalar_lea.vmem (!%p240_p9), [#allocation2], %s955_s21 }
  0x15   : > { %s271_s13 = scalar_select %p270_p10, %s915_s28, 1 }
  0x17   : > { %s648_s14 = sshll.u32 %s271_s13, 3  ;;  %s970_s13 = smov 0  }
  0x18   : > { %s273_s19 = scalar_lea.vmem %s1057_s0, %s648_s14 }
  0x19   : > { %v275_v1 = vld [vmem:[%s273_s19] sm:$0xff] }
  0x1a   : > { %v277_v2 = vsel %vm276_vm0, %v275_v1, 0.0  ;;  %v315_v3 = vadd.f32 %v651_v0, %v275_v1  }
  0x1b   : > { %278 = vadd.xlane.f32.xlu0 %v277_v2 }
  0xa8   : > { %v279_v4 = vpop.xlane.xlu0 %278 }
  0xa9   : > { %v281_v5 = vmul.f32 0.03125, %v279_v4 }
  0xab   : > { %v282_v6 = vsub.f32 %v275_v1, %v281_v5 }
  0xad   : > { %v283_v7 = vmul.f32 %v282_v6, %v282_v6 }
  0xaf   : > { %v284_v8 = vsel %vm276_vm0, %v283_v7, 0.0 }
  0xb0   : > { %285 = vadd.xlane.f32.xlu0 %v284_v8 }
 0x13d   : > { %v286_v9 = vpop.xlane.xlu0 %285 }
 0x13e   : > { %v287_v10 = vmul.f32 0.03125, %v286_v9 }
 0x140   : > { %v288_v11 = vadd.f32 1e-05, %v287_v10 }
 0x142   : > { %761 = vrsqrt.f32 %v288_v11 }
 0x14c   : > { %v762_v12 = vpop.eup %761 }
 0x14d   : > { %v290_v14 = vmul.f32 %v762_v12, %v282_v6 }
 0x14f   : > { %v298_v16 = vmul.f32 %v649_v13, %v290_v14 }
 0x151   : > { %v963_v17 = vadd.f32 %v650_v15, %v298_v16 }
 0x153   : > { %v307_v18 = vpack.c.bf16 %v963_v17, %v963_v17 }
 0x154 LB: >> { %v849_v19 = vmov 0.0   ;;  %vm850_vm1 = vmmov 0   ;;  %s666_s14 = sshll.u32 %s847_s13, 4  ;;  %s330_s22 = scalar_lea.vmem %s1061_s4, %s847_s13  ;;  %vm397_vm2 = vcmask 64512   ;;  %vm461_vm3 = vcmask 1043456   ;;  %s847_s13 = sphi %s970_s13, %s321_s13   ;;  %v843_v3 = vphi %v315_v3, %v1067_v3  }
 0x155   : >> { %676 = vmatprep.subr.bf16.mxu0 %v849_v19  ;;  %680 = vmatprep.mubr.msk.bf16.mxu0 %vm850_vm1, %v849_v19  ;;  %s325_s17 = scalar_lea.vmem %s1060_s3, %s666_s14  ;;  %v654_v22 = vld [vmem:[%s330_s22] ss:$0 sm:$0xff]  ;;  %s851_s23 = smov 120  }
 0x156   : >> { %684 = vmatprep.subr.bf16.mxu1 %v849_v19  ;;  %686 = vmatprep.mubr.msk.bf16.mxu1 %vm850_vm1, %v849_v19  ;;  %v763_v20 = vld [vmem:[%s325_s17] sm:$0xff]   ;;  %v764_v21 = vld [vmem:[%s325_s17 + $0x8] sm:$0xff]   ;;  %s852_s29 = smov 112   ;;  %s660_s8 = sshll.u32 %s847_s13, 2 }
 0x157   : >> { %677 = vmatpush3.bf16.msra.mxu0 %v763_v20  ;;  %s507_s16 = scalar_lea.vmem %s1062_s5, %s660_s8  ;;  %s321_s13 = sadd.s32 1, %s847_s13  }
 0x158   : >> { %678 = vmatprep.subr.bf16.mxu0 %v849_v19  ;;  %v508_v41 = vld [vmem:[%s507_s16] sm:$0xf]  ;;  %p318_p11 = scmp.ge.s32.totalorder %s321_s13, 4  }
 0x159   : >> { %v513_v42 = vsel %vm461_vm3, %v508_v41, 0  ;;  %s663_s17 = sshll.u32 (%p318_p11), %s915_s28, 7  ;;  %s558_s13 = scalar_lea.sflag (%p318_p11), [#allocation3], %s267_s20 }
 0x15a   : > { %s1017_s22 = scalar_lea.hbm (%p318_p11), %s1064_s7, %s663_s17  ;;  %s853_s8 = smov (%p318_p11), [#allocation2]  }
 0x15b   : >> { %679 = vmatpush3.bf16.msra.mxu0 %v764_v21  ;;  %s773_s14 = sshll.u32 (%p318_p11), %s853_s8, 4  ;;  %s774_s14 = int_to_ptr.vmem [resolvable:$false] %s773_s14 }
 0x15c   : >> { %690 = vmatprep.subr.bf16.mxu0 %v849_v19  ;;  %s775_s15 = scalar_lea.vmem (%p318_p11), %s774_s14, 256 }
 0x15e   : >> { %681 = vmatmul.mubr.msk.bf16.vlgmr.msra.gmra.mrb[0].mxu0 %vm276_vm0, %v307_v18 }
 0x15f   : >> { %692 = vmatprep.mubr.msk.bf16.mxu0 %vm850_vm1, %v849_v19 }
 0x231   : >> { %v387_v23 = vpop.f32.mrb[0].mxu0 }
 0x232   : >> { %v388_v24 = vadd.f32 %v654_v22, %v387_v23  ;;  %v682_v25 = vpop.f32.mrb[1].mxu0 }
 0x233   : >> { %v390_v26 = vpop.f32.mrb[2].mxu0 }
 0x234   : >> { %v393_v27 = vpack.c.bf16 %v388_v24, %v388_v24  ;;  %v683_v28 = vpop.f32.mrb[3].mxu0 }
 0x236   : >> { %395 = vrot.lane.b32.xlu0 %v393_v27, %s851_s23  ;;  %s571_s23 = sshll.u32 (%p318_p11), %s269_s9, 4  ;;  %s572_s23 = int_to_ptr.vmem [resolvable:$true] %s571_s23 }
 0x237   : > { %p776_p1 = scmp.lt.s32.totalorder (%p318_p11), %s572_s23, %s774_s14 }
 0x2a8   : >> { %v396_v29 = vpop.permute.xlu0 %395 }
 0x2a9   : >> { %v402_v30 = vsel %vm397_vm2, %v396_v29, 0 }
 0x2aa   : >> { %685 = vmatpush3.bf16.xpose.msra.mxu1 %v402_v30 }
 0x2ab   : >> { %696 = vmatprep.subr.bf16.mxu1 %v849_v19 }
 0x2b1   : >> { %687 = vmatmul.mubr.msk.bf16.vlgmr.msra.gmra.mrb[0].mxu1 %vm397_vm2, %v393_v27 }
 0x2b2   : >> { %698 = vmatprep.mubr.msk.bf16.mxu1 %vm850_vm1, %v849_v19  ;;  %697 = vmatpush3.bf16.msra.mxu1 %v513_v42 }
 0x384   : >> { %v438_v31 = vpop.f32.mrb[0].mxu1 }
 0x385   : >> { %v688_v32 = vpop.f32.mrb[1].mxu1  ;;  %v444_v33 = vsel %vm397_vm2, %v438_v31, -inf }
 0x386   : >> { %445 = vmax.xlane.f32.xlu0 %v444_v33  ;;  %v441_v34 = vpop.f32.mrb[2].mxu1 }
 0x387   : >> { %v689_v35 = vpop.f32.mrb[3].mxu1 }
 0x413   : >> { %v446_v36 = vpop.xlane.xlu0 %445 }
 0x414   : >> { %v447_v37 = vsub.f32 %v438_v31, %v446_v36 }
 0x416   : >> { %v448_v38 = vmul.f32 1.442695, %v447_v37 }
 0x418   : >> { %765 = vpow2.f32 %v448_v38 }
 0x422   : >> { %v766_v39 = vpop.eup %765 }
 0x423   : >> { %v450_v40 = vsel %vm397_vm2, %v766_v39, 0.0 }
 0x424   : >> { %451 = vadd.xlane.f32.xlu1 %v450_v40 }
 0x435   : >> { %456 = vrot.lane.b32.xlu1 %v393_v27, %s852_s29  ;;  %s769_s29 = scalar_lea.vmem (%p318_p11), %s572_s23, 128 }
 0x436   : > { %p770_p12 = scmp.ne.s32.totalorder (%p318_p11), %s572_s23, %s769_s29  ;;  %p777_p2 = scmp.lt.s32.totalorder (%p318_p11), %s775_s15, %s769_s29 }
 0x438   : > { %p771_p13 = pnand (%p318_p11), %p770_p12, %p932_p5  ;;  %p778_p3 = por (%p318_p11), %p777_p2, %p776_p1 }
 0x43a   : > { %p772_p0 = pneg (%p318_p11), %p771_p13 }
 0x43c   : > { %p779_p4 = pnand (%p318_p11), %p778_p3, %p772_p0 }
 0x4b1   : >> { %v452_v43 = vpop.xlane.xlu1 %451 }
 0x4b2   : >> { %767 = vrcp.f32 %v452_v43 }
 0x4b5   : >> { %v457_v44 = vpop.permute.xlu1 %456 }
 0x4b6   : >> { %v463_v45 = vsel %vm461_vm3, %v457_v44, 0 }
 0x4b7   : >> { %691 = vmatpush3.bf16.msra.mxu0 %v463_v45 }
 0x4bc   : >> { %v768_v46 = vpop.eup %767 }
 0x4bd   : >> { %v454_v47 = vmul.f32 %v768_v46, %v766_v39 }
 0x4bf   : >> { %v455_v48 = vpack.c.bf16 %v454_v47, %v454_v47 }
 0x4c1   : >> { %693 = vmatmul.mubr.msk.bf16.vlgmr.msra.gmra.mrb[4].mxu0 %vm397_vm2, %v455_v48 }
 0x594   : >> { %v499_v49 = vpop.f32.mrb[4].mxu0 }
 0x595   : >> { %v505_v50 = vpack.c.bf16 %v499_v49, %v499_v49  ;;  %v694_v51 = vpop.f32.mrb[5].mxu0 }
 0x596   : >> { %v502_v52 = vpop.f32.mrb[6].mxu0 }
 0x597   : >> { %v695_v53 = vpop.f32.mrb[7].mxu0  ;;  %699 = vmatmul.mubr.msk.bf16.vlgmr.msra.gmra.mrb[4].mxu1 %vm397_vm2, %v505_v50 }
 0x667   : > { %320 = sbr.rel (!%p318_p11) target bundleno = 340 (0x154), region = 93 }
 0x66a   : >> { %v549_v54 = vpop.f32.mrb[4].mxu1 }
 0x66b   : >> { %v555_v55 = vadd.f32 %v843_v3, %v549_v54   ;;  %v700_v56 = vpop.f32.mrb[5].mxu1 }
 0x66c   : >> { %v552_v57 = vpop.f32.mrb[6].mxu1 }
 0x66d   : >> { %v701_v58 = vpop.f32.mrb[7].mxu1  ;;  %v1067_v3 = vmov %v555_v55  ;;  %556 = vst.msk [vmem:[%s269_s9] sm:$0xff] (%p318_p11), %vm276_vm0, %v555_v55 }
 0x66e   : > { %782 = shalt.err (!%p779_p4)
}
 0x66f   : > { %s783_s28 = scalar_lea.hbm %s1017_s22, 128  ;;  %s787_s9 = scalar_lea.hbm %s1064_s7, 256 }
 0x670   : > { %p784_p7 = scmp.ne.s32.totalorder %s1017_s22, %s783_s28  ;;  %p788_p10 = scmp.lt.u32.totalorder %s1017_s22, %s1064_s7 }
 0x671   : > { %p789_p11 = scmp.lt.u32.totalorder %s787_s9, %s783_s28  ;;  %p791_p13 = scmp.lt.u32.totalorder %s783_s28, %s1017_s22 }
 0x672   : > { %p785_p8 = pnand %p784_p7, %p932_p5 }
 0x673   : > { %p790_p12 = por %p789_p11, %p788_p10 }
 0x674   : > { %p786_p9 = pneg %p785_p8 }
 0x675   : > { %p792_p0 = por %p791_p13, %p790_p12 }
 0x677   : > { %p793_p1 = pnand %p792_p0, %p786_p9 }
 0x679   : > { %796 = shalt.err (!%p793_p1)
}
 0x67a   : > { %702 = dma.vmem_to_hbm [thread:$0]  (%p932_p5), %s572_s23, 128, %s1017_s22, %s558_s13  }
 0x67b PF: > { %p708_p2 = scmp.ge.s32.totalorder %s839_s27, 2  ;;  %s583_s18 = sand.u32 1, %s827_s24  }
 0x67c   : > { %s584_s19 = scalar_lea.sflag [#allocation3], %s583_s18 }
 0x67d   : > { %p705_p3 = pnand %p708_p2, %p936_p6 }
 0x67f   : > { %822 = dma.done.wait (!%p705_p3), %s584_s19, 128  }
 0x680   : > { %824 = vsyncadd (!%p705_p3), %s584_s19, 4294967168  ;;  %p17_p4 = scmp.ge.s32.totalorder %s919_s30, 4   ;;  %s1068_s24 = smov %s831_s25 }
 0x681   : > { %s1069_s25 = smov %s835_s26  ;;  %s1070_s26 = smov %s930_s10 }
 0x682   : > { %s1071_s27 = smov %s919_s30  ;;  %19 = sbr.rel (!%p17_p4) target bundleno = 3 (0x3), region = 104 }
 0x689   :  { %589 = vsyncpa [#allocation3], 1 }
 0x68a   :  { %591 = vsyncpa [#allocation3 + $0x1], 1 }

</bundles_post_ra>
